<compile_context>
chip_gen: v7x
topology: tpu7x:2x2x1
jax: 0.10.0
libtpu: 0.0.40
codegen_flags: <defaults>
</compile_context>

<pallas_src>
import functools

import jax
import jax.numpy as jnp
from jax.experimental import pallas as pl
from jax.experimental.pallas import tpu as pltpu


def _round_up(x, m):
    return ((x + m - 1) // m) * m


def _actor_kernel(log_std_min, log_std_max, a_pad, act_dtype,
                  obs_ref, w0_ref, b0_ref, w1_ref, b1_ref, wh_ref, bh_ref,
                  out_ref):
    cd = w0_ref.dtype                       # MXU input dtype (f32 or bf16)

    # cast the already-loaded VMEM tile (no wrapper-side XLA cast/pad pass)
    x = obs_ref[...].astype(cd)

    # trunk MLP: MXU matmuls; elementwise bias+ReLU in act_dtype
    # (act_dtype=f32 -> v5e-safe; act_dtype=bf16 -> no cast passes on v6e/v7x)
    h = jnp.dot(x, w0_ref[...], preferred_element_type=act_dtype)
    h = jnp.maximum(h + b0_ref[...].astype(act_dtype), 0).astype(cd)
    h = jnp.dot(h, w1_ref[...], preferred_element_type=act_dtype)
    h = jnp.maximum(h + b1_ref[...].astype(act_dtype), 0).astype(cd)

    # fused head: one (Hp, 2*Ap) matmul == final 2*action_dim linear (f32 out)
    head = jnp.dot(h, wh_ref[...], preferred_element_type=jnp.float32) + bh_ref[...]
    mu = head[:, :a_pad]                    # lane-aligned static slices == chunk(2)
    log_std = head[:, a_pad:2 * a_pad]

    # log_std squashing + rescaling into [log_std_min, log_std_max] (f32, EUP)
    log_std = jnp.tanh(log_std)
    log_std = log_std_min + 0.5 * (log_std_max - log_std_min) * (log_std + 1.0)

    # single lane-dense output slab: [mu | std | tanh(mu)], all 128-aligned
    out_ref[:, 0:a_pad] = mu
    out_ref[:, a_pad:2 * a_pad] = jnp.exp(log_std)
    out_ref[:, 2 * a_pad:3 * a_pad] = jnp.tanh(mu)   # SquashedNormal(mu, std).mean


def pack_params(params, compute_dtype=jnp.bfloat16):
    """Pad hidden/action dims to 128-lane multiples and fuse the mu/log_std heads.

    The obs feature dim D is left UNPADDED (full-array trailing dims are exempt
    from the (8,128) rule; padding it only inflates obs DMA bytes with zeros).
    """
    (w0, b0, w1, b1, wmu, bmu, wls, bls) = params
    D, H = w0.shape
    A = wmu.shape[1]
    Hp, Ap = _round_up(H, 128), _round_up(A, 128)

    w0p = jnp.zeros((D, Hp), compute_dtype).at[:, :H].set(w0.astype(compute_dtype))
    b0p = jnp.zeros((1, Hp), jnp.float32).at[:, :H].set(b0.astype(jnp.float32))
    w1p = jnp.zeros((Hp, Hp), compute_dtype).at[:H, :H].set(w1.astype(compute_dtype))
    b1p = jnp.zeros((1, Hp), jnp.float32).at[:, :H].set(b1.astype(jnp.float32))
    # fused head weight: [:, :A] = mu head, [:, Ap:Ap+A] = log_std head
    whp = (jnp.zeros((Hp, 2 * Ap), compute_dtype)
           .at[:H, :A].set(wmu.astype(compute_dtype))
           .at[:H, Ap:Ap + A].set(wls.astype(compute_dtype)))
    bhp = (jnp.zeros((1, 2 * Ap), jnp.float32)
           .at[:, :A].set(bmu.astype(jnp.float32))
           .at[:, Ap:Ap + A].set(bls.astype(jnp.float32)))

    dims = (D, A, Hp, Ap)
    return (w0p, b0p, w1p, b1p, whp, bhp), dims


def diag_gaussian_actor_forward(obs, packed, dims, log_std_bounds, *,
                                block_b=None, act_dtype=jnp.float32):
    """Returns (mu, std, squashed_mean) of the action distribution."""
    (w0p, b0p, w1p, b1p, whp, bhp) = packed
    D, A, Hp, Ap = dims
    B = obs.shape[0]
    lo, hi = log_std_bounds

    # batch tile: multiple of 8 sublanes; >=2 grid steps for B>=16 so both
    # v7x TensorCores get work, capped at 1024 (one/two big tiles on v5e/v6e)
    if block_b is None:
        if B >= 16:
            block_b = min(1024, _round_up(pl.cdiv(B, 2), 8))
        else:
            block_b = _round_up(B, 8)
    block_b = _round_up(block_b, 8)
    Bp = _round_up(B, block_b)

    if Bp == B:
        obs_in = obs                      # no wrapper pre-pass at all
    else:
        # row-only zero padding (zeros stay finite through ReLU/tanh/exp and
        # the padded rows are discarded below)
        obs_in = jnp.pad(obs, ((0, Bp - B), (0, 0)))

    kernel = functools.partial(_actor_kernel, float(lo), float(hi), Ap, act_dtype)

    def resident(shape):
        nd = len(shape)
        # block index never changes -> single buffer (no double-buffer VMEM waste)
        return pl.BlockSpec(shape, lambda i: (0,) * nd,
                            pipeline_mode=pl.Buffered(1))

    out = pl.pallas_call(
        kernel,
        out_shape=jax.ShapeDtypeStruct((Bp, 3 * Ap), jnp.float32),
        grid=(Bp // block_b,),
        in_specs=[
            pl.BlockSpec((block_b, D), lambda i: (i, 0)),   # obs tile (pipelined)
            resident(w0p.shape), resident(b0p.shape),        # weights stay resident
            resident(w1p.shape), resident(b1p.shape),
            resident(whp.shape), resident(bhp.shape),
        ],
        out_specs=pl.BlockSpec((block_b, 3 * Ap), lambda i: (i, 0)),
        compiler_params=pltpu.CompilerParams(
            dimension_semantics=("parallel",)),
    )(obs_in, w0p, b0p, w1p, b1p, whp, bhp)

    mu = out[:B, 0:A]
    std = out[:B, Ap:Ap + A]
    mean = out[:B, 2 * Ap:2 * Ap + A]
    return mu, std, mean


def _orthogonal(key, rows, cols):
    """Deterministic orthogonal init (same spirit as nn.init.orthogonal_)."""
    n = max(rows, cols)
    a = jax.random.normal(key, (n, n), dtype=jnp.float32)
    q, r = jnp.linalg.qr(a)
    d = jnp.sign(jnp.diag(r))
    d = jnp.where(d == 0, 1.0, d)          # guard against exact-zero diag entries
    q = q * d[None, :]
    return q[:rows, :cols].astype(jnp.float32)


def make_params(key, obs_dim, action_dim, hidden_dim):
    """Trunk with hidden_depth=2: in->H, H->H, H->2*A (split into mu / log_std heads)."""
    k0, k1, k2, k3 = jax.random.split(key, 4)
    # stored transposed vs PyTorch: (in, out); biases (1, out) for lane broadcast
    w0 = _orthogonal(k0, obs_dim, hidden_dim)
    b0 = jnp.zeros((1, hidden_dim), jnp.float32)
    w1 = _orthogonal(k1, hidden_dim, hidden_dim)
    b1 = jnp.zeros((1, hidden_dim), jnp.float32)
    wmu = _orthogonal(k2, hidden_dim, action_dim)
    bmu = jnp.zeros((1, action_dim), jnp.float32)
    wls = _orthogonal(k3, hidden_dim, action_dim)
    bls = jnp.zeros((1, action_dim), jnp.float32)
    return (w0, b0, w1, b1, wmu, bmu, wls, bls)


def _reference(obs, params, log_std_bounds, compute_dtype=jnp.float32,
               act_dtype=jnp.float32):
    """Pure-JAX reference mirroring the kernel's dtype choices."""
    (w0, b0, w1, b1, wmu, bmu, wls, bls) = params
    cd = compute_dtype
    mm = lambda x, w, pt: jnp.dot(x.astype(cd), w.astype(cd),
                                  preferred_element_type=pt)
    h = jnp.maximum(mm(obs, w0, act_dtype) + b0.astype(act_dtype), 0).astype(cd)
    h = jnp.maximum(mm(h, w1, act_dtype) + b1.astype(act_dtype), 0).astype(cd)
    mu = mm(h, wmu, jnp.float32) + bmu
    log_std = jnp.tanh(mm(h, wls, jnp.float32) + bls)
    lo, hi = log_std_bounds
    log_std = lo + 0.5 * (hi - lo) * (log_std + 1.0)
    return mu, jnp.exp(log_std), jnp.tanh(mu)


if __name__ == "__main__":
    key = jax.random.PRNGKey(0)
    k_obs, k_par = jax.random.split(key)

    B, OBS_DIM, ACTION_DIM, HIDDEN_DIM = 8, 32, 8, 32
    LOG_STD_BOUNDS = (-5.0, 2.0)

    obs = jax.random.normal(k_obs, (B, OBS_DIM), dtype=jnp.float32)
    params = make_params(k_par, OBS_DIM, ACTION_DIM, HIDDEN_DIM)

    # 1) f32 compute path: exact semantics check vs pure-JAX f32 reference.
    packed_f32, dims = pack_params(params, compute_dtype=jnp.float32)
    mu, std, mean = diag_gaussian_actor_forward(obs, packed_f32, dims, LOG_STD_BOUNDS)
    jax.block_until_ready((mu, std, mean))
    mu_r, std_r, mean_r = _reference(obs, params, LOG_STD_BOUNDS, jnp.float32)
    assert jnp.allclose(mu, mu_r, atol=1e-4, rtol=1e-4), "mu mismatch (f32)"
    assert jnp.allclose(std, std_r, atol=1e-4, rtol=1e-4), "std mismatch (f32)"
    assert jnp.allclose(mean, mean_r, atol=1e-4, rtol=1e-4), "mean mismatch (f32)"

    # 2) bf16 MXU inputs, f32 elementwise (v5e-safe default split).
    packed_bf16, dims_b = pack_params(params, compute_dtype=jnp.bfloat16)
    mu_b, std_b, mean_b = diag_gaussian_actor_forward(obs, packed_bf16, dims_b,
                                                      LOG_STD_BOUNDS)
    jax.block_until_ready((mu_b, std_b, mean_b))
    mu_rb, std_rb, mean_rb = _reference(obs, params, LOG_STD_BOUNDS, jnp.bfloat16)
    assert jnp.allclose(mu_b, mu_rb, atol=1e-2, rtol=1e-2), "mu mismatch (bf16)"
    assert jnp.allclose(std_b, std_rb, atol=1e-2, rtol=1e-2), "std mismatch (bf16)"
    assert jnp.allclose(mean_b, mean_rb, atol=1e-2, rtol=1e-2), "mean mismatch (bf16)"

    # 3) bf16 elementwise trunk (v6e/v7x perf variant: no astype passes).
    mu_a, std_a, mean_a = diag_gaussian_actor_forward(
        obs, packed_bf16, dims_b, LOG_STD_BOUNDS, act_dtype=jnp.bfloat16)
    jax.block_until_ready((mu_a, std_a, mean_a))
    mu_ra, std_ra, mean_ra = _reference(obs, params, LOG_STD_BOUNDS,
                                        jnp.bfloat16, jnp.bfloat16)
    assert jnp.allclose(mu_a, mu_ra, atol=2e-2, rtol=2e-2), "mu mismatch (bf16-act)"
    assert jnp.allclose(std_a, std_ra, atol=2e-2, rtol=2e-2), "std mismatch (bf16-act)"
    assert jnp.allclose(mean_a, mean_ra, atol=2e-2, rtol=2e-2), "mean mismatch (bf16-act)"

    # 4) ragged batch + multi-step grid (exercises row-only padding path).
    B2 = 20
    obs2 = jax.random.normal(jax.random.PRNGKey(3), (B2, OBS_DIM), dtype=jnp.float32)
    mu2, std2, mean2 = diag_gaussian_actor_forward(obs2, packed_f32, dims,
                                                   LOG_STD_BOUNDS)
    jax.block_until_ready((mu2, std2, mean2))
    mu2_r, std2_r, mean2_r = _reference(obs2, params, LOG_STD_BOUNDS, jnp.float32)
    assert jnp.allclose(mu2, mu2_r, atol=1e-4, rtol=1e-4), "mu mismatch (ragged)"
    assert jnp.allclose(std2, std2_r, atol=1e-4, rtol=1e-4), "std mismatch (ragged)"
    assert jnp.allclose(mean2, mean2_r, atol=1e-4, rtol=1e-4), "mean mismatch (ragged)"

    # TODO(synk): dist.rsample()/log_prob (SquashedNormal sampling) are
    # distribution-object methods in PyTorch, not part of forward(); only the
    # deterministic forward (mu, std, squashed mean) is computed in the kernel.
    print("KERNEL_OK")
</pallas_src>

<mosaic_0001>
module attributes {stable_mosaic.version = 11 : i64} {
  func.func @_actor_kernel(%arg0: i32, %arg1: memref<8x32xf32, #tpu.memory_space<vmem>>, %arg2: memref<32x128xf32, #tpu.memory_space<vmem>>, %arg3: memref<1x128xf32, #tpu.memory_space<vmem>>, %arg4: memref<128x128xf32, #tpu.memory_space<vmem>>, %arg5: memref<1x128xf32, #tpu.memory_space<vmem>>, %arg6: memref<128x256xf32, #tpu.memory_space<vmem>>, %arg7: memref<1x256xf32, #tpu.memory_space<vmem>>, %arg8: memref<8x384xf32, #tpu.memory_space<vmem>>) attributes {dimension_semantics = [#tpu.dimension_semantics<parallel>], iteration_bounds = array<i64: 1>, scalar_prefetch = 0 : i64, scratch_operands = 0 : i64, tpu.core_type = #tpu.core_type<tc>, window_params = [{transform_indices = @transform_0, window_bounds = array<i64: 8, 32>}, {pipeline_mode = #tpu.pipeline_mode<synchronous>, transform_indices = @transform_1, window_bounds = array<i64: 32, 128>}, {pipeline_mode = #tpu.pipeline_mode<synchronous>, transform_indices = @transform_2, window_bounds = array<i64: 1, 128>}, {pipeline_mode = #tpu.pipeline_mode<synchronous>, transform_indices = @transform_3, window_bounds = array<i64: 128, 128>}, {pipeline_mode = #tpu.pipeline_mode<synchronous>, transform_indices = @transform_4, window_bounds = array<i64: 1, 128>}, {pipeline_mode = #tpu.pipeline_mode<synchronous>, transform_indices = @transform_5, window_bounds = array<i64: 128, 256>}, {pipeline_mode = #tpu.pipeline_mode<synchronous>, transform_indices = @transform_6, window_bounds = array<i64: 1, 256>}, {transform_indices = @transform_7, window_bounds = array<i64: 8, 384>}]} {
    %c0 = arith.constant 0 : index
    %c0_0 = arith.constant 0 : index
    %0 = vector.load %arg1[%c0, %c0_0] : memref<8x32xf32, #tpu.memory_space<vmem>>, vector<8x32xf32>
    %c0_1 = arith.constant 0 : index
    %c0_2 = arith.constant 0 : index
    %1 = vector.load %arg2[%c0_1, %c0_2] : memref<32x128xf32, #tpu.memory_space<vmem>>, vector<32x128xf32>
    %cst = arith.constant dense<0.000000e+00> : vector<8x128xf32>
    %2 = tpu.matmul %0, %1, %cst {dimension_numbers = #tpu.dot_dimension_numbers<[1], [0], [0], [1], [0, 0, 1, 1], [], []>} : vector<8x32xf32>, vector<32x128xf32>, vector<8x128xf32> -> vector<8x128xf32>
    %c0_3 = arith.constant 0 : index
    %c0_4 = arith.constant 0 : index
    %3 = vector.load %arg3[%c0_3, %c0_4] : memref<1x128xf32, #tpu.memory_space<vmem>>, vector<1x128xf32>
    %4 = vector.broadcast %3 : vector<1x128xf32> to vector<8x128xf32>
    %5 = arith.addf %2, %4 : vector<8x128xf32>
    %cst_5 = arith.constant 0.000000e+00 : f32
    %6 = vector.broadcast %cst_5 : f32 to vector<8x128xf32>
    %7 = arith.maximumf %5, %6 : vector<8x128xf32>
    %c0_6 = arith.constant 0 : index
    %c0_7 = arith.constant 0 : index
    %8 = vector.load %arg4[%c0_6, %c0_7] : memref<128x128xf32, #tpu.memory_space<vmem>>, vector<128x128xf32>
    %cst_8 = arith.constant dense<0.000000e+00> : vector<8x128xf32>
    %9 = tpu.matmul %7, %8, %cst_8 {dimension_numbers = #tpu.dot_dimension_numbers<[1], [0], [0], [1], [0, 0, 1, 1], [], []>} : vector<8x128xf32>, vector<128x128xf32>, vector<8x128xf32> -> vector<8x128xf32>
    %c0_9 = arith.constant 0 : index
    %c0_10 = arith.constant 0 : index
    %10 = vector.load %arg5[%c0_9, %c0_10] : memref<1x128xf32, #tpu.memory_space<vmem>>, vector<1x128xf32>
    %11 = vector.broadcast %10 : vector<1x128xf32> to vector<8x128xf32>
    %12 = arith.addf %9, %11 : vector<8x128xf32>
    %cst_11 = arith.constant 0.000000e+00 : f32
    %13 = vector.broadcast %cst_11 : f32 to vector<8x128xf32>
    %14 = arith.maximumf %12, %13 : vector<8x128xf32>
    %c0_12 = arith.constant 0 : index
    %c0_13 = arith.constant 0 : index
    %15 = vector.load %arg6[%c0_12, %c0_13] : memref<128x256xf32, #tpu.memory_space<vmem>>, vector<128x256xf32>
    %cst_14 = arith.constant dense<0.000000e+00> : vector<8x256xf32>
    %16 = tpu.matmul %14, %15, %cst_14 {dimension_numbers = #tpu.dot_dimension_numbers<[1], [0], [0], [1], [0, 0, 1, 1], [], []>} : vector<8x128xf32>, vector<128x256xf32>, vector<8x256xf32> -> vector<8x256xf32>
    %c0_15 = arith.constant 0 : index
    %c0_16 = arith.constant 0 : index
    %17 = vector.load %arg7[%c0_15, %c0_16] : memref<1x256xf32, #tpu.memory_space<vmem>>, vector<1x256xf32>
    %18 = vector.broadcast %17 : vector<1x256xf32> to vector<8x256xf32>
    %19 = arith.addf %16, %18 : vector<8x256xf32>
    %20 = vector.extract_strided_slice %19 {offsets = [0, 0], sizes = [8, 128], strides = [1, 1]} : vector<8x256xf32> to vector<8x128xf32>
    %21 = vector.extract_strided_slice %19 {offsets = [0, 128], sizes = [8, 128], strides = [1, 1]} : vector<8x256xf32> to vector<8x128xf32>
    %22 = math.tanh %21 : vector<8x128xf32>
    %cst_17 = arith.constant 1.000000e+00 : f32
    %23 = vector.broadcast %cst_17 : f32 to vector<8x128xf32>
    %24 = arith.addf %22, %23 : vector<8x128xf32>
    %cst_18 = arith.constant 3.500000e+00 : f32
    %25 = vector.broadcast %cst_18 : f32 to vector<8x128xf32>
    %26 = arith.mulf %25, %24 : vector<8x128xf32>
    %cst_19 = arith.constant -5.000000e+00 : f32
    %27 = vector.broadcast %cst_19 : f32 to vector<8x128xf32>
    %28 = arith.addf %27, %26 : vector<8x128xf32>
    %c0_20 = arith.constant 0 : index
    %c0_21 = arith.constant 0 : index
    %29 = vector.load %arg8[%c0_20, %c0_21] : memref<8x384xf32, #tpu.memory_space<vmem>>, vector<8x128xf32>
    tpu.vector_store %arg8[%c0_20, %c0_21], %20 {strides = array<i32>} : memref<8x384xf32, #tpu.memory_space<vmem>>, vector<8x128xf32>,
    %30 = math.exp %28 : vector<8x128xf32>
    %c0_22 = arith.constant 0 : index
    %c128 = arith.constant 128 : index
    %31 = vector.load %arg8[%c0_22, %c128] : memref<8x384xf32, #tpu.memory_space<vmem>>, vector<8x128xf32>
    tpu.vector_store %arg8[%c0_22, %c128], %30 {strides = array<i32>} : memref<8x384xf32, #tpu.memory_space<vmem>>, vector<8x128xf32>,
    %32 = math.tanh %20 : vector<8x128xf32>
    %c0_23 = arith.constant 0 : index
    %c256 = arith.constant 256 : index
    %33 = vector.load %arg8[%c0_23, %c256] : memref<8x384xf32, #tpu.memory_space<vmem>>, vector<8x128xf32>
    tpu.vector_store %arg8[%c0_23, %c256], %32 {strides = array<i32>} : memref<8x384xf32, #tpu.memory_space<vmem>>, vector<8x128xf32>,
    return
  }
  func.func @transform_0(%arg0: i32) -> (i32, i32) {
    %c0_i32 = arith.constant 0 : i32
    %c0_i32_0 = arith.constant 0 : i32
    return %arg0, %c0_i32 : i32, i32
  }
  func.func @transform_1(%arg0: i32) -> (i32, i32) {
    %c0_i32 = arith.constant 0 : i32
    %c0_i32_0 = arith.constant 0 : i32
    %c0_i32_1 = arith.constant 0 : i32
    return %c0_i32, %c0_i32_0 : i32, i32
  }
  func.func @transform_2(%arg0: i32) -> (i32, i32) {
    %c0_i32 = arith.constant 0 : i32
    %c0_i32_0 = arith.constant 0 : i32
    %c0_i32_1 = arith.constant 0 : i32
    return %c0_i32, %c0_i32_0 : i32, i32
  }
  func.func @transform_3(%arg0: i32) -> (i32, i32) {
    %c0_i32 = arith.constant 0 : i32
    %c0_i32_0 = arith.constant 0 : i32
    %c0_i32_1 = arith.constant 0 : i32
    return %c0_i32, %c0_i32_0 : i32, i32
  }
  func.func @transform_4(%arg0: i32) -> (i32, i32) {
    %c0_i32 = arith.constant 0 : i32
    %c0_i32_0 = arith.constant 0 : i32
    %c0_i32_1 = arith.constant 0 : i32
    return %c0_i32, %c0_i32_0 : i32, i32
  }
  func.func @transform_5(%arg0: i32) -> (i32, i32) {
    %c0_i32 = arith.constant 0 : i32
    %c0_i32_0 = arith.constant 0 : i32
    %c0_i32_1 = arith.constant 0 : i32
    return %c0_i32, %c0_i32_0 : i32, i32
  }
  func.func @transform_6(%arg0: i32) -> (i32, i32) {
    %c0_i32 = arith.constant 0 : i32
    %c0_i32_0 = arith.constant 0 : i32
    %c0_i32_1 = arith.constant 0 : i32
    return %c0_i32, %c0_i32_0 : i32, i32
  }
  func.func @transform_7(%arg0: i32) -> (i32, i32) {
    %c0_i32 = arith.constant 0 : i32
    %c0_i32_0 = arith.constant 0 : i32
    return %arg0, %c0_i32 : i32, i32
  }
}

</mosaic_0001>

<bundles_post_ra>
// kernel: tpu_custom_call.1
= control target key start
LH: loop header
LB: loop body
LE: loop exit
PB: predicated region body
PF: predicated region fallthrough
CT: control target
= control target key end

     0   :  { %12 = vsyncpa [#allocation3], 0  ;;  %s799_s0 = inlined_call_operand.hbm [shape: f32[8,32], index: 0, kind: input, shape index: {}]   ;;  %s800_s1 = inlined_call_operand.hbm [shape: f32[32,128], index: 1, kind: input, shape index: {}]   ;;  %s801_s2 = inlined_call_operand.vmem [shape: f32[1,128], index: 2, kind: input, shape index: {}]   ;;  %s802_s3 = inlined_call_operand.hbm [shape: f32[128,128], index: 3, kind: input, shape index: {}]   ;;  %s803_s4 = inlined_call_operand.vmem [shape: f32[1,128], index: 4, kind: input, shape index: {}]   ;;  %s804_s5 = inlined_call_operand.hbm [shape: f32[128,256], index: 5, kind: input, shape index: {}]   ;;  %s805_s6 = inlined_call_operand.vmem [shape: f32[1,256], index: 6, kind: input, shape index: {}]   ;;  %s806_s7 = inlined_call_operand.hbm [shape: f32[8,384], index: 7, kind: output, shape index: {}]  }
   0x1   :  { %13 = vsyncpa [#allocation6], 0 }
   0x2   :  { %14 = vsyncpa [#allocation9], 0 }
   0x3   :  { %15 = vsyncpa [#allocation4], 0  ;;  %s672_s24 = smov [#allocation5]   ;;  %s554_s28 = scalar_lea.hbm %s800_s1, 512 }
   0x4   :  { %s31_s25 = sshll.u32 %s672_s24, 4  ;;  %p555_p0 = scmp.ne.s32.totalorder %s800_s1, %s554_s28  ;;  %s32_s25 = int_to_ptr.vmem [resolvable:$true] %s31_s25 }
   0x5   :  { %p558_p1 = scmp.lt.u32.totalorder %s554_s28, %s800_s1 }
   0x7   :  { %p560_p2 = pnand %p558_p1, %p555_p0 }
   0x9   :  { %563 = shalt.err (!%p560_p2)
}
   0xa   :  { %s564_s10 = scalar_lea.vmem %s32_s25, 512  ;;  %p569_p4 = scmp.lt.s32.totalorder %s32_s25, %s32_s25 }
   0xb   :  { %p565_p3 = scmp.ne.s32.totalorder %s32_s25, %s564_s10  ;;  %p570_p5 = scmp.lt.s32.totalorder %s564_s10, %s564_s10 }
   0xd   :  { %p571_p6 = por %p570_p5, %p569_p4 }
   0xf   :  { %p572_p7 = pnand %p571_p6, %p565_p3 }
  0x11   :  { %575 = shalt.err (!%p572_p7)
}
  0x12   :  { %s673_s11 = smov 128   ;;  %s674_s12 = smov 8  }
  0x13   :  { %37 = dma.hbm_to_vmem [thread:$0]  %s800_s1, 512, %s32_s25, [#allocation6], %s673_s11, %s673_s11, %s674_s12  }
  0x14   :  { %s675_s15 = smov [#allocation2]   ;;  %s676_s17 = smov [#allocation7]  }
  0x15   :  { %s22_s16 = sshll.u32 %s675_s15, 4  ;;  %s45_s18 = sshll.u32 %s676_s17, 4  ;;  %s23_s16 = int_to_ptr.vmem [resolvable:$true] %s22_s16  ;;  %s46_s18 = int_to_ptr.vmem [resolvable:$true] %s45_s18 }
  0x16   :  { %s576_s21 = scalar_lea.hbm %s799_s0, 128 }
  0x17   :  { %p577_p8 = scmp.ne.s32.totalorder %s799_s0, %s576_s21  ;;  %p580_p9 = scmp.lt.u32.totalorder %s576_s21, %s799_s0 }
  0x19   :  { %p582_p10 = pnand %p580_p9, %p577_p8 }
  0x1b   :  { %585 = shalt.err (!%p582_p10)
}
  0x1c   :  { %s586_s1 = scalar_lea.vmem %s23_s16, 128  ;;  %p591_p12 = scmp.lt.s32.totalorder %s23_s16, %s23_s16 }
  0x1d   :  { %p587_p11 = scmp.ne.s32.totalorder %s23_s16, %s586_s1  ;;  %p592_p13 = scmp.lt.s32.totalorder %s586_s1, %s586_s1 }
  0x1f   :  { %p593_p0 = por %p592_p13, %p591_p12 }
  0x21   :  { %p594_p1 = pnand %p593_p0, %p587_p11 }
  0x23   :  { %597 = shalt.err (!%p594_p1)
}
  0x24   :  { %25 = dma.hbm_to_vmem [thread:$0]  %s799_s0, 128, %s23_s16, [#allocation3]  }
  0x25   :  { %s598_s30 = scalar_lea.hbm %s802_s3, 2048 }
  0x26   :  { %p599_p2 = scmp.ne.s32.totalorder %s802_s3, %s598_s30  ;;  %p602_p3 = scmp.lt.u32.totalorder %s598_s30, %s802_s3 }
  0x28   :  { %p604_p4 = pnand %p602_p3, %p599_p2 }
  0x2a   :  { %607 = shalt.err (!%p604_p4)
}
  0x2b   :  { %s608_s14 = scalar_lea.vmem %s46_s18, 2048  ;;  %p613_p6 = scmp.lt.s32.totalorder %s46_s18, %s46_s18 }
  0x2c   :  { %p609_p5 = scmp.ne.s32.totalorder %s46_s18, %s608_s14  ;;  %p614_p7 = scmp.lt.s32.totalorder %s608_s14, %s608_s14 }
  0x2e   :  { %p615_p8 = por %p614_p7, %p613_p6 }
  0x30   :  { %p616_p9 = pnand %p615_p8, %p609_p5 }
  0x32   :  { %619 = shalt.err (!%p616_p9)
}
  0x33   :  { %51 = dma.hbm_to_vmem [thread:$0]  %s802_s3, 2048, %s46_s18, [#allocation6], %s673_s11, %s673_s11, %s674_s12  }
  0x34   :  { %s677_s16 = smov [#allocation8]   ;;  %s620_s21 = scalar_lea.hbm %s804_s5, 4096 }
  0x35   :  { %s59_s17 = sshll.u32 %s677_s16, 4  ;;  %p621_p10 = scmp.ne.s32.totalorder %s804_s5, %s620_s21  ;;  %s60_s17 = int_to_ptr.vmem [resolvable:$true] %s59_s17 }
  0x36   :  { %p624_p11 = scmp.lt.u32.totalorder %s620_s21, %s804_s5 }
  0x38   :  { %p626_p12 = pnand %p624_p11, %p621_p10 }
  0x3a   :  { %629 = shalt.err (!%p626_p12)
}
  0x3b   :  { %s630_s1 = scalar_lea.vmem %s60_s17, 4096  ;;  %p635_p0 = scmp.lt.s32.totalorder %s60_s17, %s60_s17 }
  0x3c   :  { %p631_p13 = scmp.ne.s32.totalorder %s60_s17, %s630_s1  ;;  %p636_p1 = scmp.lt.s32.totalorder %s630_s1, %s630_s1 }
  0x3e   :  { %p637_p2 = por %p636_p1, %p635_p0 }
  0x40   :  { %p638_p3 = pnand %p637_p2, %p631_p13 }
  0x42   :  { %641 = shalt.err (!%p638_p3)
}
  0x43   :  { %s678_s3 = smov 256   ;;  %s679_s11 = smov 16  }
  0x44   :  { %65 = dma.hbm_to_vmem [thread:$0]  %s804_s5, 4096, %s60_s17, [#allocation9], %s678_s3, %s678_s3, %s679_s11  }
  0x45   :  { %664 = dma.done.wait [#allocation3], 128  }
  0x46   :  { %665 = vsyncadd [#allocation3], 4294967168 }
  0x47   :  { %666 = dma.done.wait [#allocation6], 2560  }
  0x48   :  { %667 = vsyncadd [#allocation6], 4294964736 }
  0x49   :  { %668 = dma.done.wait [#allocation9], 4096  }
  0x4a   :  { %669 = vsyncadd [#allocation9], 4294963200  ;;  %v680_v0 = vmov 0.0|0.0   ;;  %vm681_vm0 = vmmov 0   ;;  %v682_v1 = vmov 0.0   ;;  %v81_v2 = vld [vmem:[#allocation5] sm:$0xff] }
  0x4b   :  { %474 = vmatprep.subr.bf16.mxu0 %v680_v0  ;;  %436 = vmatprep.mubr.msk.f32.mxu0 %vm681_vm0, %v682_v1  ;;  %v82_v3 = vld [vmem:[#allocation5 + $0x8] sm:$0xff]  ;;  %v83_v4 = vld [vmem:[#allocation5 + $0x10] sm:$0xff]  ;;  %v84_v6 = vld [vmem:[#allocation5 + $0x18] sm:$0xff]  ;;  %vm92_vm1 = vcmask 261120  }
  0x4c   :  { %480 = vmatprep.subr.bf16.mxu1 %v680_v0  ;;  %471 = vmatprep.mubr.msk.f32.mxu1 %vm681_vm0, %v682_v1  ;;  %v475_v5 = vpack.c.bf16 %v82_v3, %v81_v2  ;;  %v167_v7 = vld [vmem:[#allocation7] sm:$0xff]  ;;  %v168_v8 = vld [vmem:[#allocation7 + $0x8] sm:$0xff]  ;;  %v169_v9 = vld [vmem:[#allocation7 + $0x10] sm:$0xff]  ;;  %v478_v11 = vpack.c.bf16 %v84_v6, %v83_v4 }
  0x4d   :  { %v170_v10 = vld [vmem:[#allocation7 + $0x18] sm:$0xff]  ;;  %v481_v12 = vpack.c.bf16 %v168_v8, %v167_v7  ;;  %v171_v14 = vld [vmem:[#allocation7 + $0x20] sm:$0xff]  ;;  %v172_v15 = vld [vmem:[#allocation7 + $0x28] sm:$0xff] }
  0x4e   :  { %476 = vmatpush3.bf16.msra.mxu0 %v475_v5  ;;  %v484_v13 = vpack.c.bf16 %v170_v10, %v169_v9  ;;  %v80_v16 = vld [vmem:[#allocation2] sm:$0xff]  ;;  %v487_v17 = vpack.c.bf16 %v172_v15, %v171_v14  ;;  %v173_v18 = vld [vmem:[#allocation7 + $0x30] sm:$0xff]  ;;  %v175_v21 = vld [vmem:[#allocation7 + $0x40] sm:$0xff] }
  0x4f   :  { %477 = vmatprep.subr.bf16.mxu0 %v680_v0  ;;  %482 = vmatpush3.bf16.msra.mxu1 %v481_v12  ;;  %v174_v19 = vld [vmem:[#allocation7 + $0x38] sm:$0xff]  ;;  %v176_v22 = vld [vmem:[#allocation7 + $0x48] sm:$0xff]  ;;  %v177_v24 = vld [vmem:[#allocation7 + $0x50] sm:$0xff] }
  0x50   :  { %483 = vmatprep.subr.bf16.mxu1 %v680_v0  ;;  %v490_v20 = vpack.c.bf16 %v174_v19, %v173_v18  ;;  %v493_v23 = vpack.c.bf16 %v176_v22, %v175_v21  ;;  %v178_v25 = vld [vmem:[#allocation7 + $0x58] sm:$0xff]  ;;  %v179_v27 = vld [vmem:[#allocation7 + $0x60] sm:$0xff]  ;;  %v180_v28 = vld [vmem:[#allocation7 + $0x68] sm:$0xff] }
  0x51   :  { %v496_v26 = vpack.c.bf16 %v178_v25, %v177_v24  ;;  %v499_v29 = vpack.c.bf16 %v180_v28, %v179_v27  ;;  %v181_v30 = vld [vmem:[#allocation7 + $0x70] sm:$0xff]  ;;  %v182_v31 = vld [vmem:[#allocation7 + $0x78] sm:$0xff]  ;;  %v262_v33 = vld [vmem:[#allocation8 + $0x8] sm:$0xff]  ;;  %v295_v27 = vlaneseq }
  0x52   :  { %479 = vmatpush3.bf16.msra.mxu0 %v478_v11  ;;  %v502_v32 = vpack.c.bf16 %v182_v31, %v181_v30  ;;  %v264_v34 = vld [vmem:[#allocation8 + $0x18] sm:$0xff]  ;;  %v261_v35 = vld [vmem:[#allocation8] sm:$0xff]  ;;  %v263_v37 = vld [vmem:[#allocation8 + $0x10] sm:$0xff] }
  0x53   :  { %485 = vmatpush3.bf16.msra.mxu1 %v484_v13  ;;  %v504_v36 = vpack.c.bf16 %v264_v34, %v262_v33  ;;  %v266_v38 = vld [vmem:[#allocation8 + $0x28] sm:$0xff]  ;;  %v268_v39 = vld [vmem:[#allocation8 + $0x38] sm:$0xff]  ;;  %v506_v40 = vpack.c.bf16 %v263_v37, %v261_v35  ;;  %v265_v42 = vld [vmem:[#allocation8 + $0x20] sm:$0xff]  ;;  %v296_v28 = vshrl.u32 %v295_v27, 7 }
  0x54   :  { %486 = vmatprep.subr.bf16.mxu1 %v680_v0  ;;  %v508_v41 = vpack.c.bf16 %v268_v39, %v266_v38  ;;  %v267_v43 = vld [vmem:[#allocation8 + $0x30] sm:$0xff]  ;;  %v270_v44 = vld [vmem:[#allocation8 + $0x48] sm:$0xff]  ;;  %v272_v45 = vld [vmem:[#allocation8 + $0x58] sm:$0xff] }
  0x55   :  { %437 = vmatmul.mubr.msk.f32.vlgmr.msra.gmra.mrb[0].mxu0 %vm92_vm1, %v80_v16  ;;  %505 = vmatprep.subr.bf16.mxu0 %v504_v36  ;;  %v510_v46 = vpack.c.bf16 %v267_v43, %v265_v42  ;;  %v512_v47 = vpack.c.bf16 %v272_v45, %v270_v44  ;;  %v269_v48 = vld [vmem:[#allocation8 + $0x40] sm:$0xff]  ;;  %v271_v49 = vld [vmem:[#allocation8 + $0x50] sm:$0xff]  ;;  %v274_v50 = vld [vmem:[#allocation8 + $0x68] sm:$0xff]  ;;  %v301_v31 = vsub.s32 1, %v296_v28 }
  0x56   :  { %369 = vmatprep.mubr.f32.mxu0 %v682_v1  ;;  %507 = vmatpush1.bf16.msra.mxu0 %v506_v40  ;;  %v276_v51 = vld [vmem:[#allocation8 + $0x78] sm:$0xff]  ;;  %v514_v52 = vpack.c.bf16 %v271_v49, %v269_v48  ;;  %v273_v54 = vld [vmem:[#allocation8 + $0x60] sm:$0xff]  ;;  %v275_v55 = vld [vmem:[#allocation8 + $0x70] sm:$0xff] }
  0x57   :  { %488 = vmatpush3.bf16.msra.mxu1 %v487_v17  ;;  %509 = vmatprep.subr.bf16.mxu0 %v508_v41  ;;  %v516_v53 = vpack.c.bf16 %v276_v51, %v274_v50  ;;  %v278_v56 = vld [vmem:[#allocation8 + $0x88] sm:$0xff]  ;;  %v280_v57 = vld [vmem:[#allocation8 + $0x98] sm:$0xff]  ;;  %v518_v58 = vpack.c.bf16 %v275_v55, %v273_v54  ;;  %v277_v60 = vld [vmem:[#allocation8 + $0x80] sm:$0xff] }
  0x58   :  { %489 = vmatprep.subr.bf16.mxu1 %v680_v0  ;;  %v520_v59 = vpack.c.bf16 %v280_v57, %v278_v56  ;;  %v279_v61 = vld [vmem:[#allocation8 + $0x90] sm:$0xff]  ;;  %v282_v62 = vld [vmem:[#allocation8 + $0xa8] sm:$0xff]  ;;  %v284_v63 = vld [vmem:[#allocation8 + $0xb8] sm:$0xff] }
  0x59   :  { %v524_v1 = vpack.c.bf16 %v284_v63, %v282_v62  ;;  %v281_v2 = vld [vmem:[#allocation8 + $0xa0] sm:$0xff]  ;;  %v283_v3 = vld [vmem:[#allocation8 + $0xb0] sm:$0xff]  ;;  %v286_v4 = vld [vmem:[#allocation8 + $0xc8] sm:$0xff] }
  0x5a   :  { %511 = vmatpush1.bf16.msra.mxu0 %v510_v46  ;;  %v288_v5 = vld [vmem:[#allocation8 + $0xd8] sm:$0xff]  ;;  %v526_v6 = vpack.c.bf16 %v283_v3, %v281_v2  ;;  %v285_v8 = vld [vmem:[#allocation8 + $0xc0] sm:$0xff]  ;;  %v287_v9 = vld [vmem:[#allocation8 + $0xd0] sm:$0xff] }
  0x5b   :  { %491 = vmatpush3.bf16.msra.mxu1 %v490_v20  ;;  %513 = vmatprep.subr.bf16.mxu0 %v512_v47  ;;  %v528_v7 = vpack.c.bf16 %v288_v5, %v286_v4  ;;  %v530_v10 = vpack.c.bf16 %v287_v9, %v285_v8  ;;  %v403_v11 = vld [vmem:[%s801_s2] ss:$0 sm:$0xff]  ;;  %v290_v16 = vld [vmem:[#allocation8 + $0xe8] sm:$0xff]  ;;  %v289_v19 = vld [vmem:[#allocation8 + $0xe0] sm:$0xff] }
  0x5c   :  { %492 = vmatprep.subr.bf16.mxu1 %v680_v0  ;;  %v292_v17 = vld [vmem:[#allocation8 + $0xf8] sm:$0xff]  ;;  %v291_v20 = vld [vmem:[#allocation8 + $0xf0] sm:$0xff] }
  0x5d   :  { %v532_v18 = vpack.c.bf16 %v292_v17, %v290_v16  ;;  %v534_v21 = vpack.c.bf16 %v291_v20, %v289_v19  ;;  %v405_v22 = vld [vmem:[%s803_s4] ss:$0 sm:$0xff]  ;;  %s683_s4 = smov [#allocation10]  }
  0x5e   :  { %515 = vmatpush1.bf16.msra.mxu0 %v514_v52  ;;  %v293_v30 = vld [vmem:[%s805_s6] sm:$0x3]  ;;  %s392_s6 = sshll.u32 %s683_s4, 4  ;;  %s393_s6 = int_to_ptr.vmem [resolvable:$true] %s392_s6 }
  0x5f   :  { %494 = vmatpush3.bf16.msra.mxu1 %v493_v23  ;;  %517 = vmatprep.subr.bf16.mxu0 %v516_v53  ;;  %v302_v33 = vrot.slane %v293_v30, %v301_v31  ;;  %s642_s30 = scalar_lea.vmem %s393_s6, 384  ;;  %p647_p5 = scmp.lt.s32.totalorder %s393_s6, %s393_s6 }
  0x60   :  { %495 = vmatprep.subr.bf16.mxu1 %v680_v0  ;;  %p643_p4 = scmp.ne.s32.totalorder %s393_s6, %s642_s30  ;;  %p648_p6 = scmp.lt.s32.totalorder %s642_s30, %s642_s30 }
  0x62   :  { %519 = vmatpush1.bf16.msra.mxu0 %v518_v58  ;;  %p649_p7 = por %p648_p6, %p647_p5 }
  0x63   :  { %497 = vmatpush3.bf16.msra.mxu1 %v496_v26  ;;  %521 = vmatprep.subr.bf16.mxu0 %v520_v59 }
  0x64   :  { %498 = vmatprep.subr.bf16.mxu1 %v680_v0  ;;  %p650_p8 = pnand %p649_p7, %p643_p4 }
  0x67   :  { %500 = vmatpush3.bf16.msra.mxu1 %v499_v29  ;;  %v297_v29 = vsub.s32 0, %v296_v28 }
  0x68   :  { %501 = vmatprep.subr.bf16.mxu1 %v680_v0  ;;  %v522_v0 = vpack.c.bf16 %v279_v61, %v277_v60 }
  0x6a   :  { %523 = vmatpush1.bf16.msra.mxu0 %v522_v0 }
  0x6b   :  { %503 = vmatpush3.bf16.msra.mxu1 %v502_v32  ;;  %525 = vmatprep.subr.bf16.mxu0 %v524_v1  ;;  %v298_v32 = vrot.slane %v293_v30, %v297_v29 }
  0x6e   :  { %527 = vmatpush1.bf16.msra.mxu0 %v526_v6 }
  0x6f   :  { %529 = vmatprep.subr.bf16.mxu0 %v528_v7 }
  0x72   :  { %531 = vmatpush1.bf16.msra.mxu0 %v530_v10 }
  0x73   :  { %533 = vmatprep.subr.bf16.mxu0 %v532_v18 }
  0x76   :  { %535 = vmatpush1.bf16.msra.mxu0 %v534_v21 }
 0x128   :  { %v162_v12 = vpop.f32.mrb[0].mxu0 }
 0x129   :  { %v163_v13 = vadd.f32 %v403_v11, %v162_v12  ;;  %v438_v14 = vpop.f32.mrb[1].mxu0 }
 0x12b   :  { %v166_v15 = vmax.f32 %v163_v13, 0.0 }
 0x12d   :  { %472 = vmatmul.mubr.f32.vlgmr.msra.gmra.mrb[0].mxu1 %v166_v15 }
 0x200   :  { %v256_v23 = vpop.f32.mrb[0].mxu1 }
 0x201   :  { %v257_v24 = vadd.f32 %v405_v22, %v256_v23  ;;  %v473_v25 = vpop.f32.mrb[1].mxu1 }
 0x203   :  { %v260_v26 = vmax.f32 %v257_v24, 0.0 }
 0x205   :  { %370 = vmatmul.mubr.f32.vlgmr.msra.gmra.mrb[2].mxu0 %v260_v26 }
 0x2d8   :  { %v371_v34 = vpop.f32.mrb[2].mxu0 }
 0x2d9   :  { %v372_v35 = vadd.f32 %v371_v34, %v298_v32  ;;  %v373_v36 = vpop.f32.mrb[3].mxu0 }
 0x2da   :  { %v374_v37 = vadd.f32 %v373_v36, %v302_v33 }
 0x2db   :  { %380 = vst [vmem:[#allocation10] sm:$0xff] %v372_v35  ;;  %548 = vtanh.f32 %v372_v35 }
 0x2dc   :  { %550 = vtanh.f32 %v374_v37 }
 0x2e5   :  { %v549_v38 = vpop.eup %548 }
 0x2e6   :  { %v551_v39 = vpop.eup %550  ;;  %385 = vst [vmem:[#allocation10 + $0x10] sm:$0xff] %v549_v38 }
 0x2e7   :  { %v377_v40 = vadd.f32 1.0, %v551_v39 }
 0x2e9   :  { %v378_v41 = vmul.f32 3.5, %v377_v40 }
 0x2eb   :  { %v379_v42 = vadd.f32 -5.0, %v378_v41 }
 0x2ed   :  { %v381_v43 = vmul.f32 1.442695, %v379_v42 }
 0x2ef   :  { %552 = vpow2.f32 %v381_v43 }
 0x2f9   :  { %v553_v44 = vpop.eup %552 }
 0x2fa   :  { %383 = vst [vmem:[#allocation10 + $0x8] sm:$0xff] %v553_v44 }
 0x2fb   :  { %653 = shalt.err (!%p650_p8)
}
 0x2fc   :  { %s654_s10 = scalar_lea.hbm %s806_s7, 384 }
 0x2fd   :  { %p655_p9 = scmp.ne.s32.totalorder %s806_s7, %s654_s10  ;;  %p658_p10 = scmp.lt.u32.totalorder %s654_s10, %s806_s7 }
 0x2ff   :  { %p660_p11 = pnand %p658_p10, %p655_p9 }
 0x301   :  { %663 = shalt.err (!%p660_p11)
}
 0x302   :  { %395 = dma.vmem_to_hbm [thread:$0]  %s393_s6, 384, %s806_s7, [#allocation4]  }
 0x303   :  { %670 = dma.done.wait [#allocation4], 384  }
 0x304   :  { %671 = vsyncadd [#allocation4], 4294966912 }
 0x305   :  { %399 = vsyncpa [#allocation3], 1 }
 0x306   :  { %400 = vsyncpa [#allocation6], 1 }
 0x307   :  { %401 = vsyncpa [#allocation9], 1 }
 0x308   :  { %402 = vsyncpa [#allocation4], 1 }

</bundles_post_ra>
